<compile_context>
chip_gen: v7x
topology: tpu7x:2x2x1
jax: 0.10.0
libtpu: 0.0.40
codegen_flags: <defaults>
</compile_context>

<pallas_src>
import jax
import jax.numpy as jnp
from jax import lax
from jax.experimental import pallas as pl
from jax.experimental.pallas import tpu as pltpu


def _lstm_recurrence_kernel(gx_ref, whh_ref, hc_ref, h_sc, c_sc):
    """Serial LSTM recurrence over one block of TB timesteps.

    gx_ref : (TB, B, 4H)  precomputed input projection (+bias), streamed per block
    whh_ref: (H, 4H)      resident recurrent weights (constant index_map)
    hc_ref : (TB, B, 2H)  merged output block: [:, :, :H] = h_t, [:, :, H:] = c_t
    h_sc/c_sc : (B, H) f32 running state carried across grid steps in VMEM.
    """
    blk = pl.program_id(0)

    @pl.when(blk == 0)
    def _():
        h_sc[...] = jnp.zeros_like(h_sc)
        c_sc[...] = jnp.zeros_like(c_sc)

    TB = gx_ref.shape[0]
    H = h_sc.shape[1]
    whh = whh_ref[...]  # resident (H, 4H)

    def step(t, carry):
        h_prev, c_prev = carry  # f32 (B, H)
        # The only truly serial matmul: h_{t-1} @ Whh^T (f32 accumulation).
        gates = gx_ref[t].astype(jnp.float32) + jnp.dot(
            h_prev.astype(whh.dtype), whh, preferred_element_type=jnp.float32)
        # sigmoid(x) == 0.5 * tanh(0.5 * x) + 0.5  -> single EUP op per gate,
        # affine part goes to otherwise-idle VALU slots.
        # At production H (multiple of 128) these gate slices are whole 128-lane
        # slabs; at the toy H=32 they cut inside a single vreg (acceptable here).
        i_g = 0.5 * jnp.tanh(0.5 * gates[:, 0 * H:1 * H]) + 0.5
        f_g = 0.5 * jnp.tanh(0.5 * gates[:, 1 * H:2 * H]) + 0.5
        g_g = jnp.tanh(gates[:, 2 * H:3 * H])
        o_g = 0.5 * jnp.tanh(0.5 * gates[:, 3 * H:4 * H]) + 0.5
        c_new = f_g * c_prev + i_g * g_g
        h_new = o_g * jnp.tanh(c_new)
        # One merged (B, 2H) store per timestep instead of two (B, H) stores.
        hc_ref[t] = jnp.concatenate([h_new, c_new], axis=-1).astype(hc_ref.dtype)
        return h_new, c_new

    # Short, fixed trip count: unroll for LLO scheduling visibility; h/c are
    # carried in vregs within the block and only touch VMEM at block boundaries.
    h_fin, c_fin = lax.fori_loop(0, TB, step, (h_sc[...], c_sc[...]), unroll=True)
    h_sc[...] = h_fin
    c_sc[...] = c_fin


def _pick_time_block(T, max_tb=32):
    """Largest divisor of T that is <= max_tb (timesteps per grid step).

    With the input projection hoisted out of the kernel, TB only needs to be
    large enough to amortize the ~0.35us per-grid-step overhead and to give a
    reasonably sized (TB, B, 4H) gx DMA; it no longer has to fill MXU rows.
    """
    for tb in range(min(T, max_tb), 0, -1):
        if T % tb == 0:
            return tb
    return 1


def open_lstm_forward(seq, w_ih, w_hh, b_ih, b_hh, *,
                      compute_dtype=jnp.float32, time_block=None):
    """Pallas equivalent of OpenLSTM.forward (num_layers=1, dropout=0).

    seq:  (T, B, feat_in)
    w_ih: (4H, feat_in), w_hh: (4H, H), b_ih/b_hh: (4H,)
    returns (hid, cell), each (T, 1, B, H) float32.

    compute_dtype=jnp.bfloat16 gives MXU-native matmul inputs (recommended in
    production), f32 accumulation and f32 carried h/c state.
    """
    T, B, I = seq.shape
    H = w_hh.shape[1]
    TB = time_block if time_block is not None else _pick_time_block(T)
    assert T % TB == 0, "time_block must divide T"

    # ---- Hoisted input projection (off the serial critical path) -------------
    # One large GEMM at full MXU utilization; bias added once in f32.
    wih_t = jnp.asarray(w_ih.T, compute_dtype)                      # (I, 4H)
    whh_t = jnp.asarray(w_hh.T, compute_dtype)                      # (H, 4H)
    bias = (b_ih.astype(jnp.float32)
            + b_hh.astype(jnp.float32)).reshape(1, 4 * H)           # f32
    x2d = seq.reshape(T * B, I).astype(compute_dtype)
    gx = jnp.dot(x2d, wih_t, preferred_element_type=jnp.float32,
                 precision=lax.Precision.HIGHEST) + bias
    # Stream gx in bf16 on the bf16 path (halves gx DMA / VMEM); keep f32 for
    # exact parity on the f32 path.
    gx_dtype = jnp.float32 if compute_dtype == jnp.float32 else compute_dtype
    gx = gx.astype(gx_dtype).reshape(T, B, 4 * H)

    itemsize = lambda a: jnp.dtype(a.dtype).itemsize
    cost = pl.CostEstimate(
        flops=2 * T * B * H * 4 * H + 10 * T * B * H,               # Whh GEMMs + gates
        transcendentals=4 * T * B * H,                              # 4 tanh / step / elem
        bytes_accessed=(T * B * 4 * H * itemsize(gx)                # gx stream in
                        + H * 4 * H * itemsize(whh_t)               # resident weights
                        + T * B * 2 * H * 4),                       # merged f32 output
    )

    grid_spec = pltpu.PrefetchScalarGridSpec(
        num_scalar_prefetch=0,
        grid=(T // TB,),
        in_specs=[
            pl.BlockSpec((TB, B, 4 * H), lambda i: (i, 0, 0)),  # gx time block (streamed)
            # Resident recurrent weights.  At production H (>=1024) add
            # pipeline_mode=pl.Buffered(1) (constant index_map -> single buffer)
            # and, if 8*H^2 bytes approaches the v7x VMEM budget, tile the 4H
            # gate axis with pl.ds instead of keeping it fully resident.
            pl.BlockSpec((H, 4 * H), lambda i: (0, 0)),
        ],
        out_specs=pl.BlockSpec((TB, B, 2 * H), lambda i: (i, 0, 0)),  # merged [h | c]
        scratch_shapes=[
            pltpu.VMEM((B, H), jnp.float32),                    # running h (f32)
            pltpu.VMEM((B, H), jnp.float32),                    # running c (f32)
        ],
    )

    hc = pl.pallas_call(
        _lstm_recurrence_kernel,
        out_shape=jax.ShapeDtypeStruct((T, B, 2 * H), jnp.float32),
        grid_spec=grid_spec,
        compiler_params=pltpu.CompilerParams(
            # The carried h/c state requires in-order execution of the time axis:
            # it must stay "arbitrary".  Parallelize only over batch, never time.
            dimension_semantics=("arbitrary",),
        ),
        cost_estimate=cost,
    )(gx, whh_t)

    # OpenLSTM stacks (num_layers=1, B, H) states along a new time axis.
    hid = hc[:, :, :H].reshape(T, 1, B, H)
    cell = hc[:, :, H:].reshape(T, 1, B, H)
    return hid, cell


def open_lstm_reference(seq, w_ih, w_hh, b_ih, b_hh):
    """Pure-JAX reference (matches torch.nn.LSTM cell math, gate order i,f,g,o)."""
    T, B, I = seq.shape
    H = w_hh.shape[1]
    b = b_ih + b_hh

    def step(carry, x_t):
        h, c = carry
        gates = x_t @ w_ih.T + h @ w_hh.T + b
        i_g = jax.nn.sigmoid(gates[:, 0 * H:1 * H])
        f_g = jax.nn.sigmoid(gates[:, 1 * H:2 * H])
        g_g = jnp.tanh(gates[:, 2 * H:3 * H])
        o_g = jax.nn.sigmoid(gates[:, 3 * H:4 * H])
        c_new = f_g * c + i_g * g_g
        h_new = o_g * jnp.tanh(c_new)
        return (h_new, c_new), (h_new, c_new)

    init = (jnp.zeros((B, H), jnp.float32), jnp.zeros((B, H), jnp.float32))
    _, (hs, cs) = lax.scan(step, init, seq)
    return hs.reshape(T, 1, B, H), cs.reshape(T, 1, B, H)


if __name__ == "__main__":
    # Small shapes consistent with OpenLSTM(feat_in, feat_out, num_layers=1)
    T, B = 8, 8          # sequence length, batch
    FEAT_IN, FEAT_OUT = 32, 32

    key = jax.random.PRNGKey(0)
    k_seq, k_wih, k_whh, k_bih, k_bhh = jax.random.split(key, 5)

    # Deterministic parameter init (uniform, like PyTorch's +-1/sqrt(H))
    bound = 1.0 / jnp.sqrt(FEAT_OUT)
    seq = jax.random.normal(k_seq, (T, B, FEAT_IN), jnp.float32)
    w_ih = jax.random.uniform(k_wih, (4 * FEAT_OUT, FEAT_IN), jnp.float32, -bound, bound)
    w_hh = jax.random.uniform(k_whh, (4 * FEAT_OUT, FEAT_OUT), jnp.float32, -bound, bound)
    b_ih = jax.random.uniform(k_bih, (4 * FEAT_OUT,), jnp.float32, -bound, bound)
    b_hh = jax.random.uniform(k_bhh, (4 * FEAT_OUT,), jnp.float32, -bound, bound)

    hid_ref, cell_ref = open_lstm_reference(seq, w_ih, w_hh, b_ih, b_hh)

    # f32 path: parity with the PyTorch (f32) LSTM cell math.
    hid, cell = open_lstm_forward(seq, w_ih, w_hh, b_ih, b_hh)
    jax.block_until_ready((hid, cell))
    assert hid.shape == (T, 1, B, FEAT_OUT) and cell.shape == (T, 1, B, FEAT_OUT)
    assert jnp.allclose(hid, hid_ref, atol=1e-5, rtol=1e-5)
    assert jnp.allclose(cell, cell_ref, atol=1e-5, rtol=1e-5)

    # bf16 path (MXU-native inputs, bf16 gx stream, f32 accumulation / h/c state).
    # Mixed-precision error accumulates over long T; tolerance reflects that.
    hid_bf, cell_bf = open_lstm_forward(seq, w_ih, w_hh, b_ih, b_hh,
                                        compute_dtype=jnp.bfloat16)
    jax.block_until_ready((hid_bf, cell_bf))
    assert jnp.allclose(hid_bf, hid_ref, atol=5e-2)
    assert jnp.allclose(cell_bf, cell_ref, atol=5e-2)

    print("KERNEL_OK")
</pallas_src>

<mosaic_0001>
module attributes {stable_mosaic.version = 11 : i64} {
  func.func @_lstm_recurrence_kernel(%arg0: i32, %arg1: memref<8x8x128xf32, #tpu.memory_space<vmem>>, %arg2: memref<32x128xf32, #tpu.memory_space<vmem>>, %arg3: memref<8x8x64xf32, #tpu.memory_space<vmem>>, %arg4: memref<8x32xf32, #tpu.memory_space<vmem>>, %arg5: memref<8x32xf32, #tpu.memory_space<vmem>>) attributes {dimension_semantics = [#tpu.dimension_semantics<arbitrary>], iteration_bounds = array<i64: 1>, scalar_prefetch = 0 : i64, scratch_operands = 2 : i64, tpu.core_type = #tpu.core_type<tc>, window_params = [{transform_indices = @transform_0, window_bounds = array<i64: 8, 8, 128>}, {pipeline_mode = #tpu.pipeline_mode<synchronous>, transform_indices = @transform_1, window_bounds = array<i64: 32, 128>}, {transform_indices = @transform_2, window_bounds = array<i64: 8, 8, 64>}]} {
    %c0_i32 = arith.constant 0 : i32
    %0 = arith.cmpi eq, %arg0, %c0_i32 : i32
    %1 = arith.extui %0 : i1 to i32
    %c0_i32_0 = arith.constant 0 : i32
    %2 = arith.cmpi ne, %1, %c0_i32_0 : i32
    scf.if %2 {
      %cst_122 = arith.constant 0.000000e+00 : f32
      %336 = vector.broadcast %cst_122 : f32 to vector<8x32xf32>
      %c0_123 = arith.constant 0 : index
      %c0_124 = arith.constant 0 : index
      %337 = vector.load %arg4[%c0_123, %c0_124] : memref<8x32xf32, #tpu.memory_space<vmem>>, vector<8x32xf32>
      tpu.vector_store %arg4[%c0_123, %c0_124], %336 {strides = array<i32>} : memref<8x32xf32, #tpu.memory_space<vmem>>, vector<8x32xf32>,
      %cst_125 = arith.constant 0.000000e+00 : f32
      %338 = vector.broadcast %cst_125 : f32 to vector<8x32xf32>
      %c0_126 = arith.constant 0 : index
      %c0_127 = arith.constant 0 : index
      %339 = vector.load %arg5[%c0_126, %c0_127] : memref<8x32xf32, #tpu.memory_space<vmem>>, vector<8x32xf32>
      tpu.vector_store %arg5[%c0_126, %c0_127], %338 {strides = array<i32>} : memref<8x32xf32, #tpu.memory_space<vmem>>, vector<8x32xf32>,
    } else {
    }
    %c0 = arith.constant 0 : index
    %c0_1 = arith.constant 0 : index
    %3 = vector.load %arg2[%c0, %c0_1] : memref<32x128xf32, #tpu.memory_space<vmem>>, vector<32x128xf32>
    %c0_2 = arith.constant 0 : index
    %c0_3 = arith.constant 0 : index
    %4 = vector.load %arg4[%c0_2, %c0_3] : memref<8x32xf32, #tpu.memory_space<vmem>>, vector<8x32xf32>
    %c0_4 = arith.constant 0 : index
    %c0_5 = arith.constant 0 : index
    %5 = vector.load %arg5[%c0_4, %c0_5] : memref<8x32xf32, #tpu.memory_space<vmem>>, vector<8x32xf32>
    %c0_i32_6 = arith.constant 0 : i32
    %6 = arith.index_cast %c0_i32_6 : i32 to index
    %c0_7 = arith.constant 0 : index
    %c0_8 = arith.constant 0 : index
    %7 = vector.load %arg1[%6, %c0_7, %c0_8] : memref<8x8x128xf32, #tpu.memory_space<vmem>>, vector<1x8x128xf32>
    %8 = vector.shape_cast %7 : vector<1x8x128xf32> to vector<8x128xf32>
    %cst = arith.constant dense<0.000000e+00> : vector<8x128xf32>
    %9 = tpu.matmul %4, %3, %cst {dimension_numbers = #tpu.dot_dimension_numbers<[1], [0], [0], [1], [0, 0, 1, 1], [], []>} : vector<8x32xf32>, vector<32x128xf32>, vector<8x128xf32> -> vector<8x128xf32>
    %10 = arith.addf %8, %9 : vector<8x128xf32>
    %11 = vector.extract_strided_slice %10 {offsets = [0, 0], sizes = [8, 32], strides = [1, 1]} : vector<8x128xf32> to vector<8x32xf32>
    %cst_9 = arith.constant 5.000000e-01 : f32
    %12 = vector.broadcast %cst_9 : f32 to vector<8x32xf32>
    %13 = arith.mulf %12, %11 : vector<8x32xf32>
    %14 = math.tanh %13 : vector<8x32xf32>
    %cst_10 = arith.constant 5.000000e-01 : f32
    %15 = vector.broadcast %cst_10 : f32 to vector<8x32xf32>
    %16 = arith.mulf %15, %14 : vector<8x32xf32>
    %cst_11 = arith.constant 5.000000e-01 : f32
    %17 = vector.broadcast %cst_11 : f32 to vector<8x32xf32>
    %18 = arith.addf %16, %17 : vector<8x32xf32>
    %19 = vector.extract_strided_slice %10 {offsets = [0, 32], sizes = [8, 32], strides = [1, 1]} : vector<8x128xf32> to vector<8x32xf32>
    %cst_12 = arith.constant 5.000000e-01 : f32
    %20 = vector.broadcast %cst_12 : f32 to vector<8x32xf32>
    %21 = arith.mulf %20, %19 : vector<8x32xf32>
    %22 = math.tanh %21 : vector<8x32xf32>
    %cst_13 = arith.constant 5.000000e-01 : f32
    %23 = vector.broadcast %cst_13 : f32 to vector<8x32xf32>
    %24 = arith.mulf %23, %22 : vector<8x32xf32>
    %cst_14 = arith.constant 5.000000e-01 : f32
    %25 = vector.broadcast %cst_14 : f32 to vector<8x32xf32>
    %26 = arith.addf %24, %25 : vector<8x32xf32>
    %27 = vector.extract_strided_slice %10 {offsets = [0, 64], sizes = [8, 32], strides = [1, 1]} : vector<8x128xf32> to vector<8x32xf32>
    %28 = math.tanh %27 : vector<8x32xf32>
    %29 = vector.extract_strided_slice %10 {offsets = [0, 96], sizes = [8, 32], strides = [1, 1]} : vector<8x128xf32> to vector<8x32xf32>
    %cst_15 = arith.constant 5.000000e-01 : f32
    %30 = vector.broadcast %cst_15 : f32 to vector<8x32xf32>
    %31 = arith.mulf %30, %29 : vector<8x32xf32>
    %32 = math.tanh %31 : vector<8x32xf32>
    %cst_16 = arith.constant 5.000000e-01 : f32
    %33 = vector.broadcast %cst_16 : f32 to vector<8x32xf32>
    %34 = arith.mulf %33, %32 : vector<8x32xf32>
    %cst_17 = arith.constant 5.000000e-01 : f32
    %35 = vector.broadcast %cst_17 : f32 to vector<8x32xf32>
    %36 = arith.addf %34, %35 : vector<8x32xf32>
    %37 = arith.mulf %26, %5 : vector<8x32xf32>
    %38 = arith.mulf %18, %28 : vector<8x32xf32>
    %39 = arith.addf %37, %38 : vector<8x32xf32>
    %40 = math.tanh %39 : vector<8x32xf32>
    %41 = arith.mulf %36, %40 : vector<8x32xf32>
    %42 = tpu.concatenate %41, %39 in 1 : vector<8x32xf32>, vector<8x32xf32> -> vector<8x64xf32>
    %43 = arith.index_cast %c0_i32_6 : i32 to index
    %c0_18 = arith.constant 0 : index
    %c0_19 = arith.constant 0 : index
    %44 = vector.load %arg3[%43, %c0_18, %c0_19] : memref<8x8x64xf32, #tpu.memory_space<vmem>>, vector<1x8x64xf32>
    %45 = vector.shape_cast %44 : vector<1x8x64xf32> to vector<8x64xf32>
    %46 = vector.shape_cast %42 : vector<8x64xf32> to vector<1x8x64xf32>
    tpu.vector_store %arg3[%43, %c0_18, %c0_19], %46 {strides = array<i32>} : memref<8x8x64xf32, #tpu.memory_space<vmem>>, vector<1x8x64xf32>,
    %c1_i32 = arith.constant 1 : i32
    %47 = arith.index_cast %c1_i32 : i32 to index
    %c0_20 = arith.constant 0 : index
    %c0_21 = arith.constant 0 : index
    %48 = vector.load %arg1[%47, %c0_20, %c0_21] : memref<8x8x128xf32, #tpu.memory_space<vmem>>, vector<1x8x128xf32>
    %49 = vector.shape_cast %48 : vector<1x8x128xf32> to vector<8x128xf32>
    %cst_22 = arith.constant dense<0.000000e+00> : vector<8x128xf32>
    %50 = tpu.matmul %41, %3, %cst_22 {dimension_numbers = #tpu.dot_dimension_numbers<[1], [0], [0], [1], [0, 0, 1, 1], [], []>} : vector<8x32xf32>, vector<32x128xf32>, vector<8x128xf32> -> vector<8x128xf32>
    %51 = arith.addf %49, %50 : vector<8x128xf32>
    %52 = vector.extract_strided_slice %51 {offsets = [0, 0], sizes = [8, 32], strides = [1, 1]} : vector<8x128xf32> to vector<8x32xf32>
    %cst_23 = arith.constant 5.000000e-01 : f32
    %53 = vector.broadcast %cst_23 : f32 to vector<8x32xf32>
    %54 = arith.mulf %53, %52 : vector<8x32xf32>
    %55 = math.tanh %54 : vector<8x32xf32>
    %cst_24 = arith.constant 5.000000e-01 : f32
    %56 = vector.broadcast %cst_24 : f32 to vector<8x32xf32>
    %57 = arith.mulf %56, %55 : vector<8x32xf32>
    %cst_25 = arith.constant 5.000000e-01 : f32
    %58 = vector.broadcast %cst_25 : f32 to vector<8x32xf32>
    %59 = arith.addf %57, %58 : vector<8x32xf32>
    %60 = vector.extract_strided_slice %51 {offsets = [0, 32], sizes = [8, 32], strides = [1, 1]} : vector<8x128xf32> to vector<8x32xf32>
    %cst_26 = arith.constant 5.000000e-01 : f32
    %61 = vector.broadcast %cst_26 : f32 to vector<8x32xf32>
    %62 = arith.mulf %61, %60 : vector<8x32xf32>
    %63 = math.tanh %62 : vector<8x32xf32>
    %cst_27 = arith.constant 5.000000e-01 : f32
    %64 = vector.broadcast %cst_27 : f32 to vector<8x32xf32>
    %65 = arith.mulf %64, %63 : vector<8x32xf32>
    %cst_28 = arith.constant 5.000000e-01 : f32
    %66 = vector.broadcast %cst_28 : f32 to vector<8x32xf32>
    %67 = arith.addf %65, %66 : vector<8x32xf32>
    %68 = vector.extract_strided_slice %51 {offsets = [0, 64], sizes = [8, 32], strides = [1, 1]} : vector<8x128xf32> to vector<8x32xf32>
    %69 = math.tanh %68 : vector<8x32xf32>
    %70 = vector.extract_strided_slice %51 {offsets = [0, 96], sizes = [8, 32], strides = [1, 1]} : vector<8x128xf32> to vector<8x32xf32>
    %cst_29 = arith.constant 5.000000e-01 : f32
    %71 = vector.broadcast %cst_29 : f32 to vector<8x32xf32>
    %72 = arith.mulf %71, %70 : vector<8x32xf32>
    %73 = math.tanh %72 : vector<8x32xf32>
    %cst_30 = arith.constant 5.000000e-01 : f32
    %74 = vector.broadcast %cst_30 : f32 to vector<8x32xf32>
    %75 = arith.mulf %74, %73 : vector<8x32xf32>
    %cst_31 = arith.constant 5.000000e-01 : f32
    %76 = vector.broadcast %cst_31 : f32 to vector<8x32xf32>
    %77 = arith.addf %75, %76 : vector<8x32xf32>
    %78 = arith.mulf %67, %39 : vector<8x32xf32>
    %79 = arith.mulf %59, %69 : vector<8x32xf32>
    %80 = arith.addf %78, %79 : vector<8x32xf32>
    %81 = math.tanh %80 : vector<8x32xf32>
    %82 = arith.mulf %77, %81 : vector<8x32xf32>
    %83 = tpu.concatenate %82, %80 in 1 : vector<8x32xf32>, vector<8x32xf32> -> vector<8x64xf32>
    %84 = arith.index_cast %c1_i32 : i32 to index
    %c0_32 = arith.constant 0 : index
    %c0_33 = arith.constant 0 : index
    %85 = vector.load %arg3[%84, %c0_32, %c0_33] : memref<8x8x64xf32, #tpu.memory_space<vmem>>, vector<1x8x64xf32>
    %86 = vector.shape_cast %85 : vector<1x8x64xf32> to vector<8x64xf32>
    %87 = vector.shape_cast %83 : vector<8x64xf32> to vector<1x8x64xf32>
    tpu.vector_store %arg3[%84, %c0_32, %c0_33], %87 {strides = array<i32>} : memref<8x8x64xf32, #tpu.memory_space<vmem>>, vector<1x8x64xf32>,
    %c2_i32 = arith.constant 2 : i32
    %88 = arith.index_cast %c2_i32 : i32 to index
    %c0_34 = arith.constant 0 : index
    %c0_35 = arith.constant 0 : index
    %89 = vector.load %arg1[%88, %c0_34, %c0_35] : memref<8x8x128xf32, #tpu.memory_space<vmem>>, vector<1x8x128xf32>
    %90 = vector.shape_cast %89 : vector<1x8x128xf32> to vector<8x128xf32>
    %cst_36 = arith.constant dense<0.000000e+00> : vector<8x128xf32>
    %91 = tpu.matmul %82, %3, %cst_36 {dimension_numbers = #tpu.dot_dimension_numbers<[1], [0], [0], [1], [0, 0, 1, 1], [], []>} : vector<8x32xf32>, vector<32x128xf32>, vector<8x128xf32> -> vector<8x128xf32>
    %92 = arith.addf %90, %91 : vector<8x128xf32>
    %93 = vector.extract_strided_slice %92 {offsets = [0, 0], sizes = [8, 32], strides = [1, 1]} : vector<8x128xf32> to vector<8x32xf32>
    %cst_37 = arith.constant 5.000000e-01 : f32
    %94 = vector.broadcast %cst_37 : f32 to vector<8x32xf32>
    %95 = arith.mulf %94, %93 : vector<8x32xf32>
    %96 = math.tanh %95 : vector<8x32xf32>
    %cst_38 = arith.constant 5.000000e-01 : f32
    %97 = vector.broadcast %cst_38 : f32 to vector<8x32xf32>
    %98 = arith.mulf %97, %96 : vector<8x32xf32>
    %cst_39 = arith.constant 5.000000e-01 : f32
    %99 = vector.broadcast %cst_39 : f32 to vector<8x32xf32>
    %100 = arith.addf %98, %99 : vector<8x32xf32>
    %101 = vector.extract_strided_slice %92 {offsets = [0, 32], sizes = [8, 32], strides = [1, 1]} : vector<8x128xf32> to vector<8x32xf32>
    %cst_40 = arith.constant 5.000000e-01 : f32
    %102 = vector.broadcast %cst_40 : f32 to vector<8x32xf32>
    %103 = arith.mulf %102, %101 : vector<8x32xf32>
    %104 = math.tanh %103 : vector<8x32xf32>
    %cst_41 = arith.constant 5.000000e-01 : f32
    %105 = vector.broadcast %cst_41 : f32 to vector<8x32xf32>
    %106 = arith.mulf %105, %104 : vector<8x32xf32>
    %cst_42 = arith.constant 5.000000e-01 : f32
    %107 = vector.broadcast %cst_42 : f32 to vector<8x32xf32>
    %108 = arith.addf %106, %107 : vector<8x32xf32>
    %109 = vector.extract_strided_slice %92 {offsets = [0, 64], sizes = [8, 32], strides = [1, 1]} : vector<8x128xf32> to vector<8x32xf32>
    %110 = math.tanh %109 : vector<8x32xf32>
    %111 = vector.extract_strided_slice %92 {offsets = [0, 96], sizes = [8, 32], strides = [1, 1]} : vector<8x128xf32> to vector<8x32xf32>
    %cst_43 = arith.constant 5.000000e-01 : f32
    %112 = vector.broadcast %cst_43 : f32 to vector<8x32xf32>
    %113 = arith.mulf %112, %111 : vector<8x32xf32>
    %114 = math.tanh %113 : vector<8x32xf32>
    %cst_44 = arith.constant 5.000000e-01 : f32
    %115 = vector.broadcast %cst_44 : f32 to vector<8x32xf32>
    %116 = arith.mulf %115, %114 : vector<8x32xf32>
    %cst_45 = arith.constant 5.000000e-01 : f32
    %117 = vector.broadcast %cst_45 : f32 to vector<8x32xf32>
    %118 = arith.addf %116, %117 : vector<8x32xf32>
    %119 = arith.mulf %108, %80 : vector<8x32xf32>
    %120 = arith.mulf %100, %110 : vector<8x32xf32>
    %121 = arith.addf %119, %120 : vector<8x32xf32>
    %122 = math.tanh %121 : vector<8x32xf32>
    %123 = arith.mulf %118, %122 : vector<8x32xf32>
    %124 = tpu.concatenate %123, %121 in 1 : vector<8x32xf32>, vector<8x32xf32> -> vector<8x64xf32>
    %125 = arith.index_cast %c2_i32 : i32 to index
    %c0_46 = arith.constant 0 : index
    %c0_47 = arith.constant 0 : index
    %126 = vector.load %arg3[%125, %c0_46, %c0_47] : memref<8x8x64xf32, #tpu.memory_space<vmem>>, vector<1x8x64xf32>
    %127 = vector.shape_cast %126 : vector<1x8x64xf32> to vector<8x64xf32>
    %128 = vector.shape_cast %124 : vector<8x64xf32> to vector<1x8x64xf32>
    tpu.vector_store %arg3[%125, %c0_46, %c0_47], %128 {strides = array<i32>} : memref<8x8x64xf32, #tpu.memory_space<vmem>>, vector<1x8x64xf32>,
    %c3_i32 = arith.constant 3 : i32
    %129 = arith.index_cast %c3_i32 : i32 to index
    %c0_48 = arith.constant 0 : index
    %c0_49 = arith.constant 0 : index
    %130 = vector.load %arg1[%129, %c0_48, %c0_49] : memref<8x8x128xf32, #tpu.memory_space<vmem>>, vector<1x8x128xf32>
    %131 = vector.shape_cast %130 : vector<1x8x128xf32> to vector<8x128xf32>
    %cst_50 = arith.constant dense<0.000000e+00> : vector<8x128xf32>
    %132 = tpu.matmul %123, %3, %cst_50 {dimension_numbers = #tpu.dot_dimension_numbers<[1], [0], [0], [1], [0, 0, 1, 1], [], []>} : vector<8x32xf32>, vector<32x128xf32>, vector<8x128xf32> -> vector<8x128xf32>
    %133 = arith.addf %131, %132 : vector<8x128xf32>
    %134 = vector.extract_strided_slice %133 {offsets = [0, 0], sizes = [8, 32], strides = [1, 1]} : vector<8x128xf32> to vector<8x32xf32>
    %cst_51 = arith.constant 5.000000e-01 : f32
    %135 = vector.broadcast %cst_51 : f32 to vector<8x32xf32>
    %136 = arith.mulf %135, %134 : vector<8x32xf32>
    %137 = math.tanh %136 : vector<8x32xf32>
    %cst_52 = arith.constant 5.000000e-01 : f32
    %138 = vector.broadcast %cst_52 : f32 to vector<8x32xf32>
    %139 = arith.mulf %138, %137 : vector<8x32xf32>
    %cst_53 = arith.constant 5.000000e-01 : f32
    %140 = vector.broadcast %cst_53 : f32 to vector<8x32xf32>
    %141 = arith.addf %139, %140 : vector<8x32xf32>
    %142 = vector.extract_strided_slice %133 {offsets = [0, 32], sizes = [8, 32], strides = [1, 1]} : vector<8x128xf32> to vector<8x32xf32>
    %cst_54 = arith.constant 5.000000e-01 : f32
    %143 = vector.broadcast %cst_54 : f32 to vector<8x32xf32>
    %144 = arith.mulf %143, %142 : vector<8x32xf32>
    %145 = math.tanh %144 : vector<8x32xf32>
    %cst_55 = arith.constant 5.000000e-01 : f32
    %146 = vector.broadcast %cst_55 : f32 to vector<8x32xf32>
    %147 = arith.mulf %146, %145 : vector<8x32xf32>
    %cst_56 = arith.constant 5.000000e-01 : f32
    %148 = vector.broadcast %cst_56 : f32 to vector<8x32xf32>
    %149 = arith.addf %147, %148 : vector<8x32xf32>
    %150 = vector.extract_strided_slice %133 {offsets = [0, 64], sizes = [8, 32], strides = [1, 1]} : vector<8x128xf32> to vector<8x32xf32>
    %151 = math.tanh %150 : vector<8x32xf32>
    %152 = vector.extract_strided_slice %133 {offsets = [0, 96], sizes = [8, 32], strides = [1, 1]} : vector<8x128xf32> to vector<8x32xf32>
    %cst_57 = arith.constant 5.000000e-01 : f32
    %153 = vector.broadcast %cst_57 : f32 to vector<8x32xf32>
    %154 = arith.mulf %153, %152 : vector<8x32xf32>
    %155 = math.tanh %154 : vector<8x32xf32>
    %cst_58 = arith.constant 5.000000e-01 : f32
    %156 = vector.broadcast %cst_58 : f32 to vector<8x32xf32>
    %157 = arith.mulf %156, %155 : vector<8x32xf32>
    %cst_59 = arith.constant 5.000000e-01 : f32
    %158 = vector.broadcast %cst_59 : f32 to vector<8x32xf32>
    %159 = arith.addf %157, %158 : vector<8x32xf32>
    %160 = arith.mulf %149, %121 : vector<8x32xf32>
    %161 = arith.mulf %141, %151 : vector<8x32xf32>
    %162 = arith.addf %160, %161 : vector<8x32xf32>
    %163 = math.tanh %162 : vector<8x32xf32>
    %164 = arith.mulf %159, %163 : vector<8x32xf32>
    %165 = tpu.concatenate %164, %162 in 1 : vector<8x32xf32>, vector<8x32xf32> -> vector<8x64xf32>
    %166 = arith.index_cast %c3_i32 : i32 to index
    %c0_60 = arith.constant 0 : index
    %c0_61 = arith.constant 0 : index
    %167 = vector.load %arg3[%166, %c0_60, %c0_61] : memref<8x8x64xf32, #tpu.memory_space<vmem>>, vector<1x8x64xf32>
    %168 = vector.shape_cast %167 : vector<1x8x64xf32> to vector<8x64xf32>
    %169 = vector.shape_cast %165 : vector<8x64xf32> to vector<1x8x64xf32>
    tpu.vector_store %arg3[%166, %c0_60, %c0_61], %169 {strides = array<i32>} : memref<8x8x64xf32, #tpu.memory_space<vmem>>, vector<1x8x64xf32>,
    %c4_i32 = arith.constant 4 : i32
    %170 = arith.index_cast %c4_i32 : i32 to index
    %c0_62 = arith.constant 0 : index
    %c0_63 = arith.constant 0 : index
    %171 = vector.load %arg1[%170, %c0_62, %c0_63] : memref<8x8x128xf32, #tpu.memory_space<vmem>>, vector<1x8x128xf32>
    %172 = vector.shape_cast %171 : vector<1x8x128xf32> to vector<8x128xf32>
    %cst_64 = arith.constant dense<0.000000e+00> : vector<8x128xf32>
    %173 = tpu.matmul %164, %3, %cst_64 {dimension_numbers = #tpu.dot_dimension_numbers<[1], [0], [0], [1], [0, 0, 1, 1], [], []>} : vector<8x32xf32>, vector<32x128xf32>, vector<8x128xf32> -> vector<8x128xf32>
    %174 = arith.addf %172, %173 : vector<8x128xf32>
    %175 = vector.extract_strided_slice %174 {offsets = [0, 0], sizes = [8, 32], strides = [1, 1]} : vector<8x128xf32> to vector<8x32xf32>
    %cst_65 = arith.constant 5.000000e-01 : f32
    %176 = vector.broadcast %cst_65 : f32 to vector<8x32xf32>
    %177 = arith.mulf %176, %175 : vector<8x32xf32>
    %178 = math.tanh %177 : vector<8x32xf32>
    %cst_66 = arith.constant 5.000000e-01 : f32
    %179 = vector.broadcast %cst_66 : f32 to vector<8x32xf32>
    %180 = arith.mulf %179, %178 : vector<8x32xf32>
    %cst_67 = arith.constant 5.000000e-01 : f32
    %181 = vector.broadcast %cst_67 : f32 to vector<8x32xf32>
    %182 = arith.addf %180, %181 : vector<8x32xf32>
    %183 = vector.extract_strided_slice %174 {offsets = [0, 32], sizes = [8, 32], strides = [1, 1]} : vector<8x128xf32> to vector<8x32xf32>
    %cst_68 = arith.constant 5.000000e-01 : f32
    %184 = vector.broadcast %cst_68 : f32 to vector<8x32xf32>
    %185 = arith.mulf %184, %183 : vector<8x32xf32>
    %186 = math.tanh %185 : vector<8x32xf32>
    %cst_69 = arith.constant 5.000000e-01 : f32
    %187 = vector.broadcast %cst_69 : f32 to vector<8x32xf32>
    %188 = arith.mulf %187, %186 : vector<8x32xf32>
    %cst_70 = arith.constant 5.000000e-01 : f32
    %189 = vector.broadcast %cst_70 : f32 to vector<8x32xf32>
    %190 = arith.addf %188, %189 : vector<8x32xf32>
    %191 = vector.extract_strided_slice %174 {offsets = [0, 64], sizes = [8, 32], strides = [1, 1]} : vector<8x128xf32> to vector<8x32xf32>
    %192 = math.tanh %191 : vector<8x32xf32>
    %193 = vector.extract_strided_slice %174 {offsets = [0, 96], sizes = [8, 32], strides = [1, 1]} : vector<8x128xf32> to vector<8x32xf32>
    %cst_71 = arith.constant 5.000000e-01 : f32
    %194 = vector.broadcast %cst_71 : f32 to vector<8x32xf32>
    %195 = arith.mulf %194, %193 : vector<8x32xf32>
    %196 = math.tanh %195 : vector<8x32xf32>
    %cst_72 = arith.constant 5.000000e-01 : f32
    %197 = vector.broadcast %cst_72 : f32 to vector<8x32xf32>
    %198 = arith.mulf %197, %196 : vector<8x32xf32>
    %cst_73 = arith.constant 5.000000e-01 : f32
    %199 = vector.broadcast %cst_73 : f32 to vector<8x32xf32>
    %200 = arith.addf %198, %199 : vector<8x32xf32>
    %201 = arith.mulf %190, %162 : vector<8x32xf32>
    %202 = arith.mulf %182, %192 : vector<8x32xf32>
    %203 = arith.addf %201, %202 : vector<8x32xf32>
    %204 = math.tanh %203 : vector<8x32xf32>
    %205 = arith.mulf %200, %204 : vector<8x32xf32>
    %206 = tpu.concatenate %205, %203 in 1 : vector<8x32xf32>, vector<8x32xf32> -> vector<8x64xf32>
    %207 = arith.index_cast %c4_i32 : i32 to index
    %c0_74 = arith.constant 0 : index
    %c0_75 = arith.constant 0 : index
    %208 = vector.load %arg3[%207, %c0_74, %c0_75] : memref<8x8x64xf32, #tpu.memory_space<vmem>>, vector<1x8x64xf32>
    %209 = vector.shape_cast %208 : vector<1x8x64xf32> to vector<8x64xf32>
    %210 = vector.shape_cast %206 : vector<8x64xf32> to vector<1x8x64xf32>
    tpu.vector_store %arg3[%207, %c0_74, %c0_75], %210 {strides = array<i32>} : memref<8x8x64xf32, #tpu.memory_space<vmem>>, vector<1x8x64xf32>,
    %c5_i32 = arith.constant 5 : i32
    %211 = arith.index_cast %c5_i32 : i32 to index
    %c0_76 = arith.constant 0 : index
    %c0_77 = arith.constant 0 : index
    %212 = vector.load %arg1[%211, %c0_76, %c0_77] : memref<8x8x128xf32, #tpu.memory_space<vmem>>, vector<1x8x128xf32>
    %213 = vector.shape_cast %212 : vector<1x8x128xf32> to vector<8x128xf32>
    %cst_78 = arith.constant dense<0.000000e+00> : vector<8x128xf32>
    %214 = tpu.matmul %205, %3, %cst_78 {dimension_numbers = #tpu.dot_dimension_numbers<[1], [0], [0], [1], [0, 0, 1, 1], [], []>} : vector<8x32xf32>, vector<32x128xf32>, vector<8x128xf32> -> vector<8x128xf32>
    %215 = arith.addf %213, %214 : vector<8x128xf32>
    %216 = vector.extract_strided_slice %215 {offsets = [0, 0], sizes = [8, 32], strides = [1, 1]} : vector<8x128xf32> to vector<8x32xf32>
    %cst_79 = arith.constant 5.000000e-01 : f32
    %217 = vector.broadcast %cst_79 : f32 to vector<8x32xf32>
    %218 = arith.mulf %217, %216 : vector<8x32xf32>
    %219 = math.tanh %218 : vector<8x32xf32>
    %cst_80 = arith.constant 5.000000e-01 : f32
    %220 = vector.broadcast %cst_80 : f32 to vector<8x32xf32>
    %221 = arith.mulf %220, %219 : vector<8x32xf32>
    %cst_81 = arith.constant 5.000000e-01 : f32
    %222 = vector.broadcast %cst_81 : f32 to vector<8x32xf32>
    %223 = arith.addf %221, %222 : vector<8x32xf32>
    %224 = vector.extract_strided_slice %215 {offsets = [0, 32], sizes = [8, 32], strides = [1, 1]} : vector<8x128xf32> to vector<8x32xf32>
    %cst_82 = arith.constant 5.000000e-01 : f32
    %225 = vector.broadcast %cst_82 : f32 to vector<8x32xf32>
    %226 = arith.mulf %225, %224 : vector<8x32xf32>
    %227 = math.tanh %226 : vector<8x32xf32>
    %cst_83 = arith.constant 5.000000e-01 : f32
    %228 = vector.broadcast %cst_83 : f32 to vector<8x32xf32>
    %229 = arith.mulf %228, %227 : vector<8x32xf32>
    %cst_84 = arith.constant 5.000000e-01 : f32
    %230 = vector.broadcast %cst_84 : f32 to vector<8x32xf32>
    %231 = arith.addf %229, %230 : vector<8x32xf32>
    %232 = vector.extract_strided_slice %215 {offsets = [0, 64], sizes = [8, 32], strides = [1, 1]} : vector<8x128xf32> to vector<8x32xf32>
    %233 = math.tanh %232 : vector<8x32xf32>
    %234 = vector.extract_strided_slice %215 {offsets = [0, 96], sizes = [8, 32], strides = [1, 1]} : vector<8x128xf32> to vector<8x32xf32>
    %cst_85 = arith.constant 5.000000e-01 : f32
    %235 = vector.broadcast %cst_85 : f32 to vector<8x32xf32>
    %236 = arith.mulf %235, %234 : vector<8x32xf32>
    %237 = math.tanh %236 : vector<8x32xf32>
    %cst_86 = arith.constant 5.000000e-01 : f32
    %238 = vector.broadcast %cst_86 : f32 to vector<8x32xf32>
    %239 = arith.mulf %238, %237 : vector<8x32xf32>
    %cst_87 = arith.constant 5.000000e-01 : f32
    %240 = vector.broadcast %cst_87 : f32 to vector<8x32xf32>
    %241 = arith.addf %239, %240 : vector<8x32xf32>
    %242 = arith.mulf %231, %203 : vector<8x32xf32>
    %243 = arith.mulf %223, %233 : vector<8x32xf32>
    %244 = arith.addf %242, %243 : vector<8x32xf32>
    %245 = math.tanh %244 : vector<8x32xf32>
    %246 = arith.mulf %241, %245 : vector<8x32xf32>
    %247 = tpu.concatenate %246, %244 in 1 : vector<8x32xf32>, vector<8x32xf32> -> vector<8x64xf32>
    %248 = arith.index_cast %c5_i32 : i32 to index
    %c0_88 = arith.constant 0 : index
    %c0_89 = arith.constant 0 : index
    %249 = vector.load %arg3[%248, %c0_88, %c0_89] : memref<8x8x64xf32, #tpu.memory_space<vmem>>, vector<1x8x64xf32>
    %250 = vector.shape_cast %249 : vector<1x8x64xf32> to vector<8x64xf32>
    %251 = vector.shape_cast %247 : vector<8x64xf32> to vector<1x8x64xf32>
    tpu.vector_store %arg3[%248, %c0_88, %c0_89], %251 {strides = array<i32>} : memref<8x8x64xf32, #tpu.memory_space<vmem>>, vector<1x8x64xf32>,
    %c6_i32 = arith.constant 6 : i32
    %252 = arith.index_cast %c6_i32 : i32 to index
    %c0_90 = arith.constant 0 : index
    %c0_91 = arith.constant 0 : index
    %253 = vector.load %arg1[%252, %c0_90, %c0_91] : memref<8x8x128xf32, #tpu.memory_space<vmem>>, vector<1x8x128xf32>
    %254 = vector.shape_cast %253 : vector<1x8x128xf32> to vector<8x128xf32>
    %cst_92 = arith.constant dense<0.000000e+00> : vector<8x128xf32>
    %255 = tpu.matmul %246, %3, %cst_92 {dimension_numbers = #tpu.dot_dimension_numbers<[1], [0], [0], [1], [0, 0, 1, 1], [], []>} : vector<8x32xf32>, vector<32x128xf32>, vector<8x128xf32> -> vector<8x128xf32>
    %256 = arith.addf %254, %255 : vector<8x128xf32>
    %257 = vector.extract_strided_slice %256 {offsets = [0, 0], sizes = [8, 32], strides = [1, 1]} : vector<8x128xf32> to vector<8x32xf32>
    %cst_93 = arith.constant 5.000000e-01 : f32
    %258 = vector.broadcast %cst_93 : f32 to vector<8x32xf32>
    %259 = arith.mulf %258, %257 : vector<8x32xf32>
    %260 = math.tanh %259 : vector<8x32xf32>
    %cst_94 = arith.constant 5.000000e-01 : f32
    %261 = vector.broadcast %cst_94 : f32 to vector<8x32xf32>
    %262 = arith.mulf %261, %260 : vector<8x32xf32>
    %cst_95 = arith.constant 5.000000e-01 : f32
    %263 = vector.broadcast %cst_95 : f32 to vector<8x32xf32>
    %264 = arith.addf %262, %263 : vector<8x32xf32>
    %265 = vector.extract_strided_slice %256 {offsets = [0, 32], sizes = [8, 32], strides = [1, 1]} : vector<8x128xf32> to vector<8x32xf32>
    %cst_96 = arith.constant 5.000000e-01 : f32
    %266 = vector.broadcast %cst_96 : f32 to vector<8x32xf32>
    %267 = arith.mulf %266, %265 : vector<8x32xf32>
    %268 = math.tanh %267 : vector<8x32xf32>
    %cst_97 = arith.constant 5.000000e-01 : f32
    %269 = vector.broadcast %cst_97 : f32 to vector<8x32xf32>
    %270 = arith.mulf %269, %268 : vector<8x32xf32>
    %cst_98 = arith.constant 5.000000e-01 : f32
    %271 = vector.broadcast %cst_98 : f32 to vector<8x32xf32>
    %272 = arith.addf %270, %271 : vector<8x32xf32>
    %273 = vector.extract_strided_slice %256 {offsets = [0, 64], sizes = [8, 32], strides = [1, 1]} : vector<8x128xf32> to vector<8x32xf32>
    %274 = math.tanh %273 : vector<8x32xf32>
    %275 = vector.extract_strided_slice %256 {offsets = [0, 96], sizes = [8, 32], strides = [1, 1]} : vector<8x128xf32> to vector<8x32xf32>
    %cst_99 = arith.constant 5.000000e-01 : f32
    %276 = vector.broadcast %cst_99 : f32 to vector<8x32xf32>
    %277 = arith.mulf %276, %275 : vector<8x32xf32>
    %278 = math.tanh %277 : vector<8x32xf32>
    %cst_100 = arith.constant 5.000000e-01 : f32
    %279 = vector.broadcast %cst_100 : f32 to vector<8x32xf32>
    %280 = arith.mulf %279, %278 : vector<8x32xf32>
    %cst_101 = arith.constant 5.000000e-01 : f32
    %281 = vector.broadcast %cst_101 : f32 to vector<8x32xf32>
    %282 = arith.addf %280, %281 : vector<8x32xf32>
    %283 = arith.mulf %272, %244 : vector<8x32xf32>
    %284 = arith.mulf %264, %274 : vector<8x32xf32>
    %285 = arith.addf %283, %284 : vector<8x32xf32>
    %286 = math.tanh %285 : vector<8x32xf32>
    %287 = arith.mulf %282, %286 : vector<8x32xf32>
    %288 = tpu.concatenate %287, %285 in 1 : vector<8x32xf32>, vector<8x32xf32> -> vector<8x64xf32>
    %289 = arith.index_cast %c6_i32 : i32 to index
    %c0_102 = arith.constant 0 : index
    %c0_103 = arith.constant 0 : index
    %290 = vector.load %arg3[%289, %c0_102, %c0_103] : memref<8x8x64xf32, #tpu.memory_space<vmem>>, vector<1x8x64xf32>
    %291 = vector.shape_cast %290 : vector<1x8x64xf32> to vector<8x64xf32>
    %292 = vector.shape_cast %288 : vector<8x64xf32> to vector<1x8x64xf32>
    tpu.vector_store %arg3[%289, %c0_102, %c0_103], %292 {strides = array<i32>} : memref<8x8x64xf32, #tpu.memory_space<vmem>>, vector<1x8x64xf32>,
    %c7_i32 = arith.constant 7 : i32
    %293 = arith.index_cast %c7_i32 : i32 to index
    %c0_104 = arith.constant 0 : index
    %c0_105 = arith.constant 0 : index
    %294 = vector.load %arg1[%293, %c0_104, %c0_105] : memref<8x8x128xf32, #tpu.memory_space<vmem>>, vector<1x8x128xf32>
    %295 = vector.shape_cast %294 : vector<1x8x128xf32> to vector<8x128xf32>
    %cst_106 = arith.constant dense<0.000000e+00> : vector<8x128xf32>
    %296 = tpu.matmul %287, %3, %cst_106 {dimension_numbers = #tpu.dot_dimension_numbers<[1], [0], [0], [1], [0, 0, 1, 1], [], []>} : vector<8x32xf32>, vector<32x128xf32>, vector<8x128xf32> -> vector<8x128xf32>
    %297 = arith.addf %295, %296 : vector<8x128xf32>
    %298 = vector.extract_strided_slice %297 {offsets = [0, 0], sizes = [8, 32], strides = [1, 1]} : vector<8x128xf32> to vector<8x32xf32>
    %cst_107 = arith.constant 5.000000e-01 : f32
    %299 = vector.broadcast %cst_107 : f32 to vector<8x32xf32>
    %300 = arith.mulf %299, %298 : vector<8x32xf32>
    %301 = math.tanh %300 : vector<8x32xf32>
    %cst_108 = arith.constant 5.000000e-01 : f32
    %302 = vector.broadcast %cst_108 : f32 to vector<8x32xf32>
    %303 = arith.mulf %302, %301 : vector<8x32xf32>
    %cst_109 = arith.constant 5.000000e-01 : f32
    %304 = vector.broadcast %cst_109 : f32 to vector<8x32xf32>
    %305 = arith.addf %303, %304 : vector<8x32xf32>
    %306 = vector.extract_strided_slice %297 {offsets = [0, 32], sizes = [8, 32], strides = [1, 1]} : vector<8x128xf32> to vector<8x32xf32>
    %cst_110 = arith.constant 5.000000e-01 : f32
    %307 = vector.broadcast %cst_110 : f32 to vector<8x32xf32>
    %308 = arith.mulf %307, %306 : vector<8x32xf32>
    %309 = math.tanh %308 : vector<8x32xf32>
    %cst_111 = arith.constant 5.000000e-01 : f32
    %310 = vector.broadcast %cst_111 : f32 to vector<8x32xf32>
    %311 = arith.mulf %310, %309 : vector<8x32xf32>
    %cst_112 = arith.constant 5.000000e-01 : f32
    %312 = vector.broadcast %cst_112 : f32 to vector<8x32xf32>
    %313 = arith.addf %311, %312 : vector<8x32xf32>
    %314 = vector.extract_strided_slice %297 {offsets = [0, 64], sizes = [8, 32], strides = [1, 1]} : vector<8x128xf32> to vector<8x32xf32>
    %315 = math.tanh %314 : vector<8x32xf32>
    %316 = vector.extract_strided_slice %297 {offsets = [0, 96], sizes = [8, 32], strides = [1, 1]} : vector<8x128xf32> to vector<8x32xf32>
    %cst_113 = arith.constant 5.000000e-01 : f32
    %317 = vector.broadcast %cst_113 : f32 to vector<8x32xf32>
    %318 = arith.mulf %317, %316 : vector<8x32xf32>
    %319 = math.tanh %318 : vector<8x32xf32>
    %cst_114 = arith.constant 5.000000e-01 : f32
    %320 = vector.broadcast %cst_114 : f32 to vector<8x32xf32>
    %321 = arith.mulf %320, %319 : vector<8x32xf32>
    %cst_115 = arith.constant 5.000000e-01 : f32
    %322 = vector.broadcast %cst_115 : f32 to vector<8x32xf32>
    %323 = arith.addf %321, %322 : vector<8x32xf32>
    %324 = arith.mulf %313, %285 : vector<8x32xf32>
    %325 = arith.mulf %305, %315 : vector<8x32xf32>
    %326 = arith.addf %324, %325 : vector<8x32xf32>
    %327 = math.tanh %326 : vector<8x32xf32>
    %328 = arith.mulf %323, %327 : vector<8x32xf32>
    %329 = tpu.concatenate %328, %326 in 1 : vector<8x32xf32>, vector<8x32xf32> -> vector<8x64xf32>
    %330 = arith.index_cast %c7_i32 : i32 to index
    %c0_116 = arith.constant 0 : index
    %c0_117 = arith.constant 0 : index
    %331 = vector.load %arg3[%330, %c0_116, %c0_117] : memref<8x8x64xf32, #tpu.memory_space<vmem>>, vector<1x8x64xf32>
    %332 = vector.shape_cast %331 : vector<1x8x64xf32> to vector<8x64xf32>
    %333 = vector.shape_cast %329 : vector<8x64xf32> to vector<1x8x64xf32>
    tpu.vector_store %arg3[%330, %c0_116, %c0_117], %333 {strides = array<i32>} : memref<8x8x64xf32, #tpu.memory_space<vmem>>, vector<1x8x64xf32>,
    %c8_i32 = arith.constant 8 : i32
    %c0_118 = arith.constant 0 : index
    %c0_119 = arith.constant 0 : index
    %334 = vector.load %arg4[%c0_118, %c0_119] : memref<8x32xf32, #tpu.memory_space<vmem>>, vector<8x32xf32>
    tpu.vector_store %arg4[%c0_118, %c0_119], %328 {strides = array<i32>} : memref<8x32xf32, #tpu.memory_space<vmem>>, vector<8x32xf32>,
    %c0_120 = arith.constant 0 : index
    %c0_121 = arith.constant 0 : index
    %335 = vector.load %arg5[%c0_120, %c0_121] : memref<8x32xf32, #tpu.memory_space<vmem>>, vector<8x32xf32>
    tpu.vector_store %arg5[%c0_120, %c0_121], %326 {strides = array<i32>} : memref<8x32xf32, #tpu.memory_space<vmem>>, vector<8x32xf32>,
    return
  }
  func.func @transform_0(%arg0: i32) -> (i32, i32, i32) {
    %c0_i32 = arith.constant 0 : i32
    %c0_i32_0 = arith.constant 0 : i32
    %c0_i32_1 = arith.constant 0 : i32
    return %arg0, %c0_i32, %c0_i32_0 : i32, i32, i32
  }
  func.func @transform_1(%arg0: i32) -> (i32, i32) {
    %c0_i32 = arith.constant 0 : i32
    %c0_i32_0 = arith.constant 0 : i32
    %c0_i32_1 = arith.constant 0 : i32
    return %c0_i32, %c0_i32_0 : i32, i32
  }
  func.func @transform_2(%arg0: i32) -> (i32, i32, i32) {
    %c0_i32 = arith.constant 0 : i32
    %c0_i32_0 = arith.constant 0 : i32
    %c0_i32_1 = arith.constant 0 : i32
    return %arg0, %c0_i32, %c0_i32_0 : i32, i32, i32
  }
}

</mosaic_0001>

<bundles_post_ra>
// kernel: tpu_custom_call.1
= control target key start
LH: loop header
LB: loop body
LE: loop exit
PB: predicated region body
PF: predicated region fallthrough
CT: control target
= control target key end

     0   :  { %7 = vsyncpa [#allocation5], 0  ;;  %s1415_s0 = inlined_call_operand.hbm [shape: f32[8,8,128], index: 0, kind: input, shape index: {}]   ;;  %s1416_s1 = inlined_call_operand.hbm [shape: f32[32,128], index: 1, kind: input, shape index: {}]   ;;  %s1417_s2 = inlined_call_operand.hbm [shape: f32[8,8,64], index: 2, kind: output, shape index: {}]  }
   0x1   :  { %8 = vsyncpa [#allocation8], 0 }
   0x2   :  { %9 = vsyncpa [#allocation6], 0  ;;  %s1229_s9 = smov [#allocation4]   ;;  %s1157_s13 = scalar_lea.hbm %s1415_s0, 1024 }
   0x3   :  { %s15_s10 = sshll.u32 %s1229_s9, 4  ;;  %p1158_p0 = scmp.ne.s32.totalorder %s1415_s0, %s1157_s13  ;;  %s16_s10 = int_to_ptr.vmem [resolvable:$true] %s15_s10 }
   0x4   :  { %p1161_p1 = scmp.lt.u32.totalorder %s1157_s13, %s1415_s0 }
   0x6   :  { %p1163_p2 = pnand %p1161_p1, %p1158_p0 }
   0x8   :  { %1166 = shalt.err (!%p1163_p2)
}
   0x9   :  { %s1167_s18 = scalar_lea.vmem %s16_s10, 1024  ;;  %p1172_p4 = scmp.lt.s32.totalorder %s16_s10, %s16_s10 }
   0xa   :  { %p1168_p3 = scmp.ne.s32.totalorder %s16_s10, %s1167_s18  ;;  %p1173_p5 = scmp.lt.s32.totalorder %s1167_s18, %s1167_s18 }
   0xc   :  { %p1174_p6 = por %p1173_p5, %p1172_p4 }
   0xe   :  { %p1175_p7 = pnand %p1174_p6, %p1168_p3 }
  0x10   :  { %1178 = shalt.err (!%p1175_p7)
}
  0x11   :  { %s1230_s19 = smov 128   ;;  %s1231_s20 = smov 8  }
  0x12   :  { %21 = dma.hbm_to_vmem [thread:$0]  %s1415_s0, 1024, %s16_s10, [#allocation5], %s1230_s19, %s1230_s19, %s1231_s20  }
  0x13   :  { %s1232_s23 = smov [#allocation7]   ;;  %s1179_s27 = scalar_lea.hbm %s1416_s1, 512 }
  0x14   :  { %s27_s24 = sshll.u32 %s1232_s23, 4  ;;  %p1180_p8 = scmp.ne.s32.totalorder %s1416_s1, %s1179_s27  ;;  %s28_s24 = int_to_ptr.vmem [resolvable:$true] %s27_s24 }
  0x15   :  { %p1183_p9 = scmp.lt.u32.totalorder %s1179_s27, %s1416_s1 }
  0x17   :  { %p1185_p10 = pnand %p1183_p9, %p1180_p8 }
  0x19   :  { %1188 = shalt.err (!%p1185_p10)
}
  0x1a   :  { %s1189_s4 = scalar_lea.vmem %s28_s24, 512  ;;  %p1194_p12 = scmp.lt.s32.totalorder %s28_s24, %s28_s24 }
  0x1b   :  { %p1190_p11 = scmp.ne.s32.totalorder %s28_s24, %s1189_s4  ;;  %p1195_p13 = scmp.lt.s32.totalorder %s1189_s4, %s1189_s4 }
  0x1d   :  { %p1196_p0 = por %p1195_p13, %p1194_p12 }
  0x1f   :  { %p1197_p1 = pnand %p1196_p0, %p1190_p11 }
  0x21   :  { %1200 = shalt.err (!%p1197_p1)
}
  0x22   :  { %33 = dma.hbm_to_vmem [thread:$0]  %s1416_s1, 512, %s28_s24, [#allocation8], %s1230_s19, %s1230_s19, %s1231_s20  }
  0x23   :  { %1223 = dma.done.wait [#allocation5], 1024  }
  0x24   :  { %1224 = vsyncadd [#allocation5], 4294966272 }
  0x25   :  { %1225 = dma.done.wait [#allocation8], 512  }
  0x26   :  { %1226 = vsyncadd [#allocation8], 4294966784  ;;  %vm44_vm0 = vcmask 261120   ;;  %v1233_v0 = vmov 0.0|0.0   ;;  %vm1234_vm1 = vmmov 0   ;;  %v1235_v1 = vmov 0.0  }
  0x27   :  { %1050 = vmatprep.subr.bf16.mxu0 %v1233_v0  ;;  %970 = vmatprep.mubr.msk.f32.mxu0 %vm1234_vm1, %v1235_v1  ;;  %45 = vst.msk [vmem:[#allocation2] sm:$0xff] %vm44_vm0, %v1235_v1  ;;  %46 = vst.msk [vmem:[#allocation3] sm:$0xff] %vm44_vm0, %v1235_v1  ;;  %v47_v2 = vld [vmem:[#allocation7] sm:$0xff]  ;;  %v48_v3 = vld [vmem:[#allocation7 + $0x8] sm:$0xff]  ;;  %s1236_s1 = smov 64   ;;  %s1237_s6 = smov 32  }
  0x28   :  { %1056 = vmatprep.subr.bf16.mxu1 %v1233_v0  ;;  %981 = vmatprep.mubr.msk.f32.mxu1 %vm1234_vm1, %v1235_v1  ;;  %v49_v4 = vld [vmem:[#allocation7 + $0x10] sm:$0xff]  ;;  %v1295_v5 = vpack.c.bf16 %v48_v3, %v47_v2  ;;  %v50_v6 = vld [vmem:[#allocation7 + $0x18] sm:$0xff]  ;;  %v53_v9 = vld [vmem:[#allocation4] sm:$0xff]  ;;  %vm160_vm2 = vcmask 523264   ;;  %s1238_s7 = smov 96   ;;  %s1239_s8 = smov [#allocation9]  }
  0x29   :  { %v1298_v7 = vpack.c.bf16 %v50_v6, %v49_v4  ;;  %v163_v30 = vld [vmem:[#allocation4 + $0x8] sm:$0xff]  ;;  %v267_v49 = vld [vmem:[#allocation4 + $0x10] sm:$0xff]  ;;  %s901_s9 = sshll.u32 %s1239_s8, 4  ;;  %s902_s9 = int_to_ptr.vmem [resolvable:$true] %s901_s9 }
  0x2a   :  { %1052 = vmatpush3.bf16.msra.mxu0 %v1295_v5  ;;  %1058 = vmatpush3.bf16.msra.mxu1 %v1295_v5  ;;  %s1201_s10 = scalar_lea.vmem %s902_s9, 1024  ;;  %p1206_p3 = scmp.lt.s32.totalorder %s902_s9, %s902_s9 }
  0x2b   :  { %1053 = vmatprep.subr.bf16.mxu0 %v1233_v0  ;;  %1059 = vmatprep.subr.bf16.mxu1 %v1233_v0  ;;  %p1202_p2 = scmp.ne.s32.totalorder %s902_s9, %s1201_s10  ;;  %p1207_p4 = scmp.lt.s32.totalorder %s1201_s10, %s1201_s10 }
  0x2d   :  { %p1208_p5 = por %p1207_p4, %p1206_p3 }
  0x2e   :  { %1055 = vmatpush3.bf16.msra.mxu0 %v1298_v7  ;;  %v51_v8 = vld [vmem:[#allocation2] sm:$0xff]  ;;  %1061 = vmatpush3.bf16.msra.mxu1 %v1298_v7  ;;  %v52_v14 = vld [vmem:[#allocation3] sm:$0xff] }
  0x2f   :  { %1062 = vmatprep.subr.bf16.mxu0 %v1233_v0  ;;  %1068 = vmatprep.subr.bf16.mxu1 %v1233_v0  ;;  %p1209_p6 = pnand %p1208_p5, %p1202_p2 }
  0x31   :  { %971 = vmatmul.mubr.msk.f32.vlgmr.msra.gmra.mrb[0].mxu0 %vm44_vm0, %v51_v8  ;;  %v371_v8 = vld [vmem:[#allocation4 + $0x18] sm:$0xff] }
  0x32   :  { %1064 = vmatpush3.bf16.msra.mxu0 %v1295_v5  ;;  %992 = vmatprep.mubr.msk.f32.mxu0 %vm1234_vm1, %v1235_v1 }
  0x33   :  { %1065 = vmatprep.subr.bf16.mxu0 %v1233_v0 }
  0x36   :  { %1067 = vmatpush3.bf16.msra.mxu0 %v1298_v7 }
  0x37   :  { %1074 = vmatprep.subr.bf16.mxu0 %v1233_v0 }
 0x104   :  { %v124_v10 = vpop.f32.mrb[0].mxu0 }
 0x105   :  { %v128_v11 = vadd.f32 %v124_v10, %v53_v9  ;;  %v972_v12 = vpop.f32.mrb[1].mxu0 }
 0x107   :  { %1109 = vtanh.f32 %v128_v11  ;;  %v129_v15 = vmul.f32 0.5, %v128_v11 }
 0x109   :  { %1111 = vtanh.f32 %v129_v15 }
 0x111   :  { %v1110_v13 = vpop.eup %1109 }
 0x112   :  { %140 = vrot.lane.b32.xlu0 %v1110_v13, %s1236_s1 }
 0x113   :  { %v1112_v16 = vpop.eup %1111 }
 0x114   :  { %v131_v17 = vmul.f32 0.5, %v1112_v16 }
 0x116   :  { %135 = vrot.lane.b32.xlu0 %v52_v14, %s1237_s6  ;;  %v132_v18 = vadd.f32 0.5, %v131_v17 }
 0x184   :  { %v141_v19 = vpop.permute.xlu0 %140 }
 0x185   :  { %v143_v20 = vmul.f32 %v141_v19, %v132_v18 }
 0x187   :  { %145 = vrot.lane.b32.xlu1 %v143_v20, %s1237_s6 }
 0x188   :  { %v136_v21 = vpop.permute.xlu0 %135 }
 0x189   :  { %v138_v22 = vmul.f32 %v136_v21, %v132_v18 }
 0x1f9   :  { %v146_v23 = vpop.permute.xlu1 %145 }
 0x1fa   :  { %v148_v24 = vadd.f32 %v146_v23, %v138_v22 }
 0x1fc   :  { %1113 = vtanh.f32 %v148_v24 }
 0x206   :  { %v1114_v25 = vpop.eup %1113 }
 0x207   :  { %151 = vrot.lane.b32.xlu1 %v1114_v25, %s1236_s1 }
 0x279   :  { %v152_v26 = vpop.permute.xlu1 %151 }
 0x27a   :  { %v154_v27 = vmul.f32 %v152_v26, %v132_v18 }
 0x27c   :  { %156 = vrot.lane.b32.xlu0 %v154_v27, %s1237_s6  ;;  %v475_v27 = vld [vmem:[#allocation4 + $0x20] sm:$0xff] }
 0x2ee   :  { %v157_v28 = vpop.permute.xlu0 %156 }
 0x2ef   :  { %v159_v29 = vsel %vm44_vm0, %v157_v28, %v148_v24  ;;  %982 = vmatmul.mubr.msk.f32.vlgmr.msra.gmra.mrb[0].mxu1 %vm44_vm0, %v157_v28 }
 0x2f0   :  { %161 = vst.msk [vmem:[#allocation9] sm:$0xff] %vm160_vm2, %v159_v29  ;;  %1070 = vmatpush3.bf16.msra.mxu1 %v1295_v5  ;;  %1003 = vmatprep.mubr.msk.f32.mxu1 %vm1234_vm1, %v1235_v1 }
 0x2f1   :  { %1071 = vmatprep.subr.bf16.mxu1 %v1233_v0 }
 0x2f4   :  { %1073 = vmatpush3.bf16.msra.mxu1 %v1298_v7 }
 0x2f5   :  { %1080 = vmatprep.subr.bf16.mxu1 %v1233_v0 }
 0x3c2   :  { %v232_v31 = vpop.f32.mrb[0].mxu1 }
 0x3c3   :  { %v236_v32 = vadd.f32 %v232_v31, %v163_v30  ;;  %v983_v33 = vpop.f32.mrb[1].mxu1 }
 0x3c5   :  { %1115 = vtanh.f32 %v236_v32  ;;  %v237_v35 = vmul.f32 0.5, %v236_v32 }
 0x3c7   :  { %1117 = vtanh.f32 %v237_v35 }
 0x3cf   :  { %v1116_v34 = vpop.eup %1115 }
 0x3d0   :  { %244 = vrot.lane.b32.xlu1 %v1116_v34, %s1236_s1 }
 0x3d1   :  { %v1118_v36 = vpop.eup %1117 }
 0x3d2   :  { %v239_v37 = vmul.f32 0.5, %v1118_v36 }
 0x3d4   :  { %v240_v38 = vadd.f32 0.5, %v239_v37 }
 0x3d6   :  { %v242_v41 = vmul.f32 %v240_v38, %v148_v24 }
 0x442   :  { %v245_v39 = vpop.permute.xlu1 %244 }
 0x443   :  { %v247_v40 = vmul.f32 %v245_v39, %v240_v38 }
 0x445   :  { %249 = vrot.lane.b32.xlu0 %v247_v40, %s1237_s6 }
 0x4b7   :  { %v250_v42 = vpop.permute.xlu0 %249 }
 0x4b8   :  { %v252_v43 = vadd.f32 %v250_v42, %v242_v41 }
 0x4ba   :  { %1119 = vtanh.f32 %v252_v43 }
 0x4c4   :  { %v1120_v44 = vpop.eup %1119 }
 0x4c5   :  { %255 = vrot.lane.b32.xlu1 %v1120_v44, %s1236_s1 }
 0x537   :  { %v256_v45 = vpop.permute.xlu1 %255 }
 0x538   :  { %v258_v46 = vmul.f32 %v256_v45, %v240_v38 }
 0x53a   :  { %260 = vrot.lane.b32.xlu0 %v258_v46, %s1237_s6  ;;  %v579_v46 = vld [vmem:[#allocation4 + $0x28] sm:$0xff] }
 0x5ac   :  { %v261_v47 = vpop.permute.xlu0 %260 }
 0x5ad   :  { %v263_v48 = vsel %vm44_vm0, %v261_v47, %v252_v43  ;;  %993 = vmatmul.mubr.msk.f32.vlgmr.msra.gmra.mrb[2].mxu0 %vm44_vm0, %v261_v47 }
 0x5ae   :  { %265 = vst.msk [vmem:[#allocation9 + $0x8] sm:$0xff] %vm160_vm2, %v263_v48  ;;  %1076 = vmatpush3.bf16.msra.mxu0 %v1295_v5  ;;  %1014 = vmatprep.mubr.msk.f32.mxu0 %vm1234_vm1, %v1235_v1 }
 0x5af   :  { %1077 = vmatprep.subr.bf16.mxu0 %v1233_v0 }
 0x5b2   :  { %1079 = vmatpush3.bf16.msra.mxu0 %v1298_v7 }
 0x5b3   :  { %1086 = vmatprep.subr.bf16.mxu0 %v1233_v0 }
 0x680   :  { %v336_v50 = vpop.f32.mrb[2].mxu0 }
 0x681   :  { %v340_v51 = vadd.f32 %v336_v50, %v267_v49  ;;  %v994_v52 = vpop.f32.mrb[3].mxu0 }
 0x683   :  { %1121 = vtanh.f32 %v340_v51  ;;  %v341_v54 = vmul.f32 0.5, %v340_v51 }
 0x685   :  { %1123 = vtanh.f32 %v341_v54 }
 0x68d   :  { %v1122_v53 = vpop.eup %1121 }
 0x68e   :  { %348 = vrot.lane.b32.xlu1 %v1122_v53, %s1236_s1 }
 0x68f   :  { %v1124_v55 = vpop.eup %1123 }
 0x690   :  { %v343_v56 = vmul.f32 0.5, %v1124_v55 }
 0x692   :  { %v344_v57 = vadd.f32 0.5, %v343_v56 }
 0x694   :  { %v346_v60 = vmul.f32 %v344_v57, %v252_v43 }
 0x700   :  { %v349_v58 = vpop.permute.xlu1 %348 }
 0x701   :  { %v351_v59 = vmul.f32 %v349_v58, %v344_v57 }
 0x703   :  { %353 = vrot.lane.b32.xlu0 %v351_v59, %s1237_s6 }
 0x775   :  { %v354_v61 = vpop.permute.xlu0 %353 }
 0x776   :  { %v356_v62 = vadd.f32 %v354_v61, %v346_v60  ;;  %v683_v61 = vld [vmem:[#allocation4 + $0x30] sm:$0xff] }
 0x778   :  { %1125 = vtanh.f32 %v356_v62 }
 0x782   :  { %v1126_v63 = vpop.eup %1125 }
 0x783   :  { %359 = vrot.lane.b32.xlu1 %v1126_v63, %s1236_s1 }
 0x7f5   :  { %v360_v2 = vpop.permute.xlu1 %359 }
 0x7f6   :  { %v362_v3 = vmul.f32 %v360_v2, %v344_v57 }
 0x7f8   :  { %364 = vrot.lane.b32.xlu0 %v362_v3, %s1237_s6 }
 0x86a   :  { %v365_v4 = vpop.permute.xlu0 %364 }
 0x86b   :  { %v367_v6 = vsel %vm44_vm0, %v365_v4, %v356_v62  ;;  %1004 = vmatmul.mubr.msk.f32.vlgmr.msra.gmra.mrb[2].mxu1 %vm44_vm0, %v365_v4 }
 0x86c   :  { %369 = vst.msk [vmem:[#allocation9 + $0x10] sm:$0xff] %vm160_vm2, %v367_v6  ;;  %1082 = vmatpush3.bf16.msra.mxu1 %v1295_v5  ;;  %1025 = vmatprep.mubr.msk.f32.mxu1 %vm1234_vm1, %v1235_v1 }
 0x86d   :  { %1083 = vmatprep.subr.bf16.mxu1 %v1233_v0 }
 0x870   :  { %1085 = vmatpush3.bf16.msra.mxu1 %v1298_v7 }
 0x871   :  { %1092 = vmatprep.subr.bf16.mxu1 %v1233_v0 }
 0x93e   :  { %v440_v9 = vpop.f32.mrb[2].mxu1 }
 0x93f   :  { %v444_v10 = vadd.f32 %v440_v9, %v371_v8  ;;  %v1005_v11 = vpop.f32.mrb[3].mxu1 }
 0x941   :  { %1127 = vtanh.f32 %v444_v10  ;;  %v445_v13 = vmul.f32 0.5, %v444_v10 }
 0x943   :  { %1129 = vtanh.f32 %v445_v13 }
 0x94b   :  { %v1128_v12 = vpop.eup %1127 }
 0x94c   :  { %452 = vrot.lane.b32.xlu1 %v1128_v12, %s1236_s1 }
 0x94d   :  { %v1130_v14 = vpop.eup %1129 }
 0x94e   :  { %v447_v15 = vmul.f32 0.5, %v1130_v14 }
 0x950   :  { %v448_v16 = vadd.f32 0.5, %v447_v15 }
 0x952   :  { %v450_v19 = vmul.f32 %v448_v16, %v356_v62 }
 0x9be   :  { %v453_v17 = vpop.permute.xlu1 %452 }
 0x9bf   :  { %v455_v18 = vmul.f32 %v453_v17, %v448_v16 }
 0x9c1   :  { %457 = vrot.lane.b32.xlu0 %v455_v18, %s1237_s6 }
 0xa33   :  { %v458_v20 = vpop.permute.xlu0 %457 }
 0xa34   :  { %v460_v21 = vadd.f32 %v458_v20, %v450_v19  ;;  %v787_v20 = vld [vmem:[#allocation4 + $0x38] sm:$0xff] }
 0xa36   :  { %1131 = vtanh.f32 %v460_v21 }
 0xa40   :  { %v1132_v22 = vpop.eup %1131 }
 0xa41   :  { %463 = vrot.lane.b32.xlu1 %v1132_v22, %s1236_s1 }
 0xab3   :  { %v464_v23 = vpop.permute.xlu1 %463 }
 0xab4   :  { %v466_v24 = vmul.f32 %v464_v23, %v448_v16 }
 0xab6   :  { %468 = vrot.lane.b32.xlu0 %v466_v24, %s1237_s6 }
 0xb28   :  { %v469_v25 = vpop.permute.xlu0 %468 }
 0xb29   :  { %v471_v26 = vsel %vm44_vm0, %v469_v25, %v460_v21  ;;  %1015 = vmatmul.mubr.msk.f32.vlgmr.msra.gmra.mrb[4].mxu0 %vm44_vm0, %v469_v25 }
 0xb2a   :  { %473 = vst.msk [vmem:[#allocation9 + $0x18] sm:$0xff] %vm160_vm2, %v471_v26  ;;  %1088 = vmatpush3.bf16.msra.mxu0 %v1295_v5  ;;  %1036 = vmatprep.mubr.msk.f32.mxu0 %vm1234_vm1, %v1235_v1 }
 0xb2b   :  { %1089 = vmatprep.subr.bf16.mxu0 %v1233_v0 }
 0xb2e   :  { %1091 = vmatpush3.bf16.msra.mxu0 %v1298_v7 }
 0xbfc   :  { %v544_v28 = vpop.f32.mrb[4].mxu0 }
 0xbfd   :  { %v548_v29 = vadd.f32 %v544_v28, %v475_v27  ;;  %v1016_v30 = vpop.f32.mrb[5].mxu0 }
 0xbff   :  { %1133 = vtanh.f32 %v548_v29  ;;  %v549_v32 = vmul.f32 0.5, %v548_v29 }
 0xc01   :  { %1135 = vtanh.f32 %v549_v32 }
 0xc09   :  { %v1134_v31 = vpop.eup %1133 }
 0xc0a   :  { %556 = vrot.lane.b32.xlu1 %v1134_v31, %s1236_s1 }
 0xc0b   :  { %v1136_v33 = vpop.eup %1135 }
 0xc0c   :  { %v551_v34 = vmul.f32 0.5, %v1136_v33 }
 0xc0e   :  { %v552_v35 = vadd.f32 0.5, %v551_v34 }
 0xc10   :  { %v554_v38 = vmul.f32 %v552_v35, %v460_v21 }
 0xc7c   :  { %v557_v36 = vpop.permute.xlu1 %556 }
 0xc7d   :  { %v559_v37 = vmul.f32 %v557_v36, %v552_v35 }
 0xc7f   :  { %561 = vrot.lane.b32.xlu0 %v559_v37, %s1237_s6 }
 0xcf1   :  { %v562_v39 = vpop.permute.xlu0 %561 }
 0xcf2   :  { %v564_v40 = vadd.f32 %v562_v39, %v554_v38 }
 0xcf4   :  { %1137 = vtanh.f32 %v564_v40 }
 0xcfe   :  { %v1138_v41 = vpop.eup %1137 }
 0xcff   :  { %567 = vrot.lane.b32.xlu1 %v1138_v41, %s1236_s1 }
 0xd71   :  { %v568_v42 = vpop.permute.xlu1 %567 }
 0xd72   :  { %v570_v43 = vmul.f32 %v568_v42, %v552_v35 }
 0xd74   :  { %572 = vrot.lane.b32.xlu0 %v570_v43, %s1237_s6 }
 0xde6   :  { %v573_v44 = vpop.permute.xlu0 %572 }
 0xde7   :  { %v575_v45 = vsel %vm44_vm0, %v573_v44, %v564_v40  ;;  %1026 = vmatmul.mubr.msk.f32.vlgmr.msra.gmra.mrb[4].mxu1 %vm44_vm0, %v573_v44 }
 0xde8   :  { %577 = vst.msk [vmem:[#allocation9 + $0x20] sm:$0xff] %vm160_vm2, %v575_v45  ;;  %1094 = vmatpush3.bf16.msra.mxu1 %v1295_v5  ;;  %1047 = vmatprep.mubr.msk.f32.mxu1 %vm1234_vm1, %v1235_v1 }
 0xde9   :  { %1095 = vmatprep.subr.bf16.mxu1 %v1233_v0 }
 0xdec   :  { %1097 = vmatpush3.bf16.msra.mxu1 %v1298_v7 }
 0xeba   :  { %v648_v47 = vpop.f32.mrb[4].mxu1 }
 0xebb   :  { %v652_v48 = vadd.f32 %v648_v47, %v579_v46  ;;  %v1027_v49 = vpop.f32.mrb[5].mxu1 }
 0xebd   :  { %1139 = vtanh.f32 %v652_v48  ;;  %v653_v51 = vmul.f32 0.5, %v652_v48 }
 0xebf   :  { %1141 = vtanh.f32 %v653_v51 }
 0xec7   :  { %v1140_v50 = vpop.eup %1139 }
 0xec8   :  { %660 = vrot.lane.b32.xlu1 %v1140_v50, %s1236_s1 }
 0xec9   :  { %v1142_v52 = vpop.eup %1141 }
 0xeca   :  { %v655_v53 = vmul.f32 0.5, %v1142_v52 }
 0xecc   :  { %v656_v5 = vadd.f32 0.5, %v655_v53 }
 0xece   :  { %v658_v0 = vmul.f32 %v656_v5, %v564_v40 }
 0xf3a   :  { %v661_v54 = vpop.permute.xlu1 %660 }
 0xf3b   :  { %v663_v55 = vmul.f32 %v661_v54, %v656_v5 }
 0xf3d   :  { %665 = vrot.lane.b32.xlu0 %v663_v55, %s1237_s6 }
 0xfaf   :  { %v666_v1 = vpop.permute.xlu0 %665 }
 0xfb0   :  { %v668_v7 = vadd.f32 %v666_v1, %v658_v0 }
 0xfb2   :  { %1143 = vtanh.f32 %v668_v7 }
 0xfbc   :  { %v1144_v56 = vpop.eup %1143 }
 0xfbd   :  { %671 = vrot.lane.b32.xlu1 %v1144_v56, %s1236_s1 }
0x102f   :  { %v672_v57 = vpop.permute.xlu1 %671 }
0x1030   :  { %v674_v58 = vmul.f32 %v672_v57, %v656_v5 }
0x1032   :  { %676 = vrot.lane.b32.xlu0 %v674_v58, %s1237_s6 }
0x10a4   :  { %v677_v59 = vpop.permute.xlu0 %676 }
0x10a5   :  { %v679_v60 = vsel %vm44_vm0, %v677_v59, %v668_v7  ;;  %1037 = vmatmul.mubr.msk.f32.vlgmr.msra.gmra.mrb[6].mxu0 %vm44_vm0, %v677_v59 }
0x10a6   :  { %681 = vst.msk [vmem:[#allocation9 + $0x28] sm:$0xff] %vm160_vm2, %v679_v60 }
0x1178   :  { %v752_v62 = vpop.f32.mrb[6].mxu0 }
0x1179   :  { %v756_v63 = vadd.f32 %v752_v62, %v683_v61  ;;  %v1038_v2 = vpop.f32.mrb[7].mxu0 }
0x117b   :  { %1145 = vtanh.f32 %v756_v63  ;;  %v757_v4 = vmul.f32 0.5, %v756_v63 }
0x117d   :  { %1147 = vtanh.f32 %v757_v4 }
0x1185   :  { %v1146_v3 = vpop.eup %1145 }
0x1186   :  { %764 = vrot.lane.b32.xlu1 %v1146_v3, %s1236_s1 }
0x1187   :  { %v1148_v6 = vpop.eup %1147 }
0x1188   :  { %v759_v8 = vmul.f32 0.5, %v1148_v6 }
0x118a   :  { %v760_v9 = vadd.f32 0.5, %v759_v8 }
0x118c   :  { %v762_v12 = vmul.f32 %v760_v9, %v668_v7 }
0x11f8   :  { %v765_v10 = vpop.permute.xlu1 %764 }
0x11f9   :  { %v767_v11 = vmul.f32 %v765_v10, %v760_v9 }
0x11fb   :  { %769 = vrot.lane.b32.xlu0 %v767_v11, %s1237_s6 }
0x126d   :  { %v770_v13 = vpop.permute.xlu0 %769 }
0x126e   :  { %v772_v14 = vadd.f32 %v770_v13, %v762_v12 }
0x1270   :  { %1149 = vtanh.f32 %v772_v14 }
0x127a   :  { %v1150_v15 = vpop.eup %1149 }
0x127b   :  { %775 = vrot.lane.b32.xlu1 %v1150_v15, %s1236_s1 }
0x12ed   :  { %v776_v16 = vpop.permute.xlu1 %775 }
0x12ee   :  { %v778_v17 = vmul.f32 %v776_v16, %v760_v9 }
0x12f0   :  { %780 = vrot.lane.b32.xlu0 %v778_v17, %s1237_s6 }
0x1362   :  { %v781_v18 = vpop.permute.xlu0 %780 }
0x1363   :  { %v783_v19 = vsel %vm44_vm0, %v781_v18, %v772_v14  ;;  %1048 = vmatmul.mubr.msk.f32.vlgmr.msra.gmra.mrb[6].mxu1 %vm44_vm0, %v781_v18 }
0x1364   :  { %785 = vst.msk [vmem:[#allocation9 + $0x30] sm:$0xff] %vm160_vm2, %v783_v19 }
0x1436   :  { %v856_v21 = vpop.f32.mrb[6].mxu1 }
0x1437   :  { %v860_v22 = vadd.f32 %v856_v21, %v787_v20  ;;  %v1049_v23 = vpop.f32.mrb[7].mxu1 }
0x1439   :  { %1151 = vtanh.f32 %v860_v22  ;;  %v861_v25 = vmul.f32 0.5, %v860_v22 }
0x143b   :  { %1153 = vtanh.f32 %v861_v25 }
0x1443   :  { %v1152_v24 = vpop.eup %1151 }
0x1444   :  { %868 = vrot.lane.b32.xlu1 %v1152_v24, %s1236_s1 }
0x1445   :  { %v1154_v26 = vpop.eup %1153 }
0x1446   :  { %v863_v27 = vmul.f32 0.5, %v1154_v26 }
0x1448   :  { %v864_v28 = vadd.f32 0.5, %v863_v27 }
0x144a   :  { %v866_v31 = vmul.f32 %v864_v28, %v772_v14 }
0x14b6   :  { %v869_v29 = vpop.permute.xlu1 %868 }
0x14b7   :  { %v871_v30 = vmul.f32 %v869_v29, %v864_v28 }
0x14b9   :  { %873 = vrot.lane.b32.xlu0 %v871_v30, %s1237_s6 }
0x152b   :  { %v874_v32 = vpop.permute.xlu0 %873 }
0x152c   :  { %v876_v33 = vadd.f32 %v874_v32, %v866_v31 }
0x152e   :  { %1155 = vtanh.f32 %v876_v33 }
0x1538   :  { %v1156_v34 = vpop.eup %1155 }
0x1539   :  { %879 = vrot.lane.b32.xlu1 %v1156_v34, %s1236_s1 }
0x153d   :  { %892 = vrot.lane.b32.xlu1 %v876_v33, %s1238_s7 }
0x15ab   :  { %v880_v35 = vpop.permute.xlu1 %879 }
0x15ac   :  { %v882_v36 = vmul.f32 %v880_v35, %v864_v28 }
0x15ae   :  { %884 = vrot.lane.b32.xlu0 %v882_v36, %s1237_s6 }
0x15af   :  { %v893_v37 = vpop.permute.xlu1 %892 }
0x15b0   :  { %895 = vst.msk [vmem:[#allocation3] sm:$0xff] %vm44_vm0, %v893_v37 }
0x1620   :  { %v885_v38 = vpop.permute.xlu0 %884 }
0x1621   :  { %v887_v39 = vsel %vm44_vm0, %v885_v38, %v876_v33  ;;  %890 = vst.msk [vmem:[#allocation2] sm:$0xff] %vm44_vm0, %v885_v38 }
0x1622   :  { %889 = vst.msk [vmem:[#allocation9 + $0x38] sm:$0xff] %vm160_vm2, %v887_v39 }
0x1623   :  { %1212 = shalt.err (!%p1209_p6)
}
0x1624   :  { %s1213_s13 = scalar_lea.hbm %s1417_s2, 1024 }
0x1625   :  { %p1214_p7 = scmp.ne.s32.totalorder %s1417_s2, %s1213_s13  ;;  %p1217_p8 = scmp.lt.u32.totalorder %s1213_s13, %s1417_s2 }
0x1627   :  { %p1219_p9 = pnand %p1217_p8, %p1214_p7 }
0x1629   :  { %1222 = shalt.err (!%p1219_p9)
}
0x162a   :  { %907 = dma.vmem_to_hbm [thread:$0]  %s902_s9, 1024, %s1417_s2, [#allocation6], %s1230_s19, %s1230_s19, %s1231_s20  }
0x162b   :  { %1227 = dma.done.wait [#allocation6], 1024  }
0x162c   :  { %1228 = vsyncadd [#allocation6], 4294966272 }
0x162d   :  { %911 = vsyncpa [#allocation5], 1 }
0x162e   :  { %912 = vsyncpa [#allocation8], 1 }
0x162f   :  { %913 = vsyncpa [#allocation6], 1 }

</bundles_post_ra>
